<compile_context>
chip_gen: v5e
topology: v5e:2x2
jax: 0.10.0
libtpu: 0.0.40
codegen_flags: <defaults>
</compile_context>

<pallas_src>
import jax
import jax.numpy as jnp
from jax.experimental import pallas as pl
from jax.experimental.pallas import tpu as pltpu


# ---------------------------------------------------------------------------
# Kernels (one VMEM tile each; pure VPU work)
# ---------------------------------------------------------------------------
def _relu_kernel(x_ref, o_ref):
    x = x_ref[...]
    o_ref[...] = jnp.maximum(x, jnp.zeros_like(x))


def _relu_jvp_kernel(x_ref, t_ref, o_ref, jvp_ref):
    x = x_ref[...]
    t = t_ref[...]
    zeros = jnp.zeros_like(x)
    pos = x > zeros                        # single compare, reused for both outs
    o_ref[...] = jnp.where(pos, x, zeros)
    jvp_ref[...] = jnp.where(pos, t, jnp.zeros_like(t))


# ---------------------------------------------------------------------------
# Layout planning
# ---------------------------------------------------------------------------
_LANE_WIDTHS = (8192, 4096, 2048, 1024, 512, 256, 128)   # candidate lane widths
_VMEM_PIPELINE_BUDGET = 16 * 1024 * 1024                 # total across all buffers
_TILE_BYTES_MIN = 2 * 1024 * 1024
_TILE_BYTES_MAX = 4 * 1024 * 1024
_VMEM_LIMIT_BYTES = 32 * 1024 * 1024                     # safe on v5e/v6e/v7x


def _sublane_pack(dtype):
    # packed sublane count: 8 for 4-byte, 16 for 2-byte, 32 for 1-byte dtypes
    return max(8, 32 // jnp.dtype(dtype).itemsize)


def _plan_2d(n, dtype, n_arrays):
    """Plan a lane-dense 2-D view of a flat length-n array.

    n_arrays = total number of input + output arrays moving through the
    pipeline (each gets 2 VMEM buffers).

    Returns (rows, lane_width, tile_rows, pad_elems).
    pad_elems == 0  => zero-copy reshape in/out (no pad, no slice).
    """
    itemsize = jnp.dtype(dtype).itemsize
    sp = _sublane_pack(dtype)

    # Per-tile byte budget from the total pipelined-VMEM budget.
    tile_bytes = _VMEM_PIPELINE_BUDGET // (2 * max(1, n_arrays))
    tile_bytes = max(_TILE_BYTES_MIN, min(_TILE_BYTES_MAX, tile_bytes))
    target_elems = tile_bytes // itemsize

    # Fast path: widest lane width that divides n exactly (free reshape).
    for w in _LANE_WIDTHS:
        if n % w != 0:
            continue
        rows = n // w
        if n * itemsize <= tile_bytes:
            # Whole tensor is a single block (block == full dims, always legal).
            return rows, w, rows, 0
        if rows % sp == 0:
            tr = min(rows, max(sp, (target_elems // w) // sp * sp))
            return rows, w, tr, 0

    # Ragged fallback: pad flat array so it reshapes to [rows, 128] with
    # sublane-aligned rows, slice the tail off afterwards.
    w = 128
    chunk = sp * w
    n_pad = pl.cdiv(n, chunk) * chunk
    rows = n_pad // w
    tr = min(rows, max(sp, (target_elems // w) // sp * sp))
    return rows, w, tr, n_pad - n


# ---------------------------------------------------------------------------
# Generic elementwise launcher (1-in/1-out or 2-in/2-out)
# ---------------------------------------------------------------------------
def _call_elementwise(kernel, arrays):
    shape = arrays[0].shape
    n = arrays[0].size
    n_arrays = 2 * len(arrays)  # same number of outputs as inputs
    rows, w, tr, pad = _plan_2d(n, arrays[0].dtype, n_arrays)

    def to2d(a):
        flat = a.reshape(-1)
        if pad:
            flat = jnp.pad(flat, (0, rows * w - n))
        return flat.reshape(rows, w)

    ins2d = [to2d(a) for a in arrays]

    spec = pl.BlockSpec((tr, w), lambda i: (i, 0))
    grid = (pl.cdiv(rows, tr),)

    outs2d = pl.pallas_call(
        kernel,
        out_shape=tuple(
            jax.ShapeDtypeStruct((rows, w), a.dtype) for a in arrays
        ),
        grid_spec=pltpu.PrefetchScalarGridSpec(
            num_scalar_prefetch=0,
            grid=grid,
            in_specs=[spec] * len(arrays),
            out_specs=[spec] * len(arrays),
        ),
        compiler_params=pltpu.CompilerParams(
            dimension_semantics=("parallel",),
            vmem_limit_bytes=_VMEM_LIMIT_BYTES,
        ),
    )(*ins2d)

    def from2d(o2d):
        if pad:
            return o2d.reshape(-1)[:n].reshape(shape)
        return o2d.reshape(shape)

    return tuple(from2d(o) for o in outs2d)


# ---------------------------------------------------------------------------
# Public wrappers (match the PyTorch module)
# ---------------------------------------------------------------------------
@jax.jit
def pallas_relu(x):
    """forward: y = relu(x), same shape/dtype as x."""
    (y,) = _call_elementwise(_relu_kernel, (x,))
    return y


@jax.jit
def pallas_relu_jvp(x, tangent):
    """jvp_forward: (relu(x), d relu(x) @ tangent) — torch.func.jvp semantics."""
    y, jvp_y = _call_elementwise(_relu_jvp_kernel, (x, tangent))
    return y, jvp_y


# ---------------------------------------------------------------------------
# Main
# ---------------------------------------------------------------------------
if __name__ == "__main__":
    key = jax.random.PRNGKey(0)
    kx, kt = jax.random.split(key)

    def check(shape, seed):
        k1, k2 = jax.random.split(jax.random.fold_in(kx, seed))
        x = jax.random.normal(k1, shape, dtype=jnp.float32)
        tan = jax.random.normal(k2, shape, dtype=jnp.float32)

        y = pallas_relu(x)
        y2, jvp_y = pallas_relu_jvp(x, tan)
        jax.block_until_ready((y, y2, jvp_y))

        y_ref = jnp.maximum(x, 0.0)
        jvp_ref = jnp.where(x > 0.0, tan, 0.0)
        assert jnp.allclose(y, y_ref), f"forward mismatch {shape}"
        assert jnp.allclose(y2, y_ref), f"jvp primal mismatch {shape}"
        assert jnp.allclose(jvp_y, jvp_ref), f"jvp tangent mismatch {shape}"

    # NCHW input as the PyTorch module would see (zero-copy fast path).
    check((2, 4, 16, 16), 0)
    # Larger tensor exercising the multi-block tiled path (partial last block).
    check((4, 64, 56, 56), 1)
    # Ragged size exercising the padded fallback path.
    check((3, 5, 7), 2)

    print("KERNEL_OK")
</pallas_src>

<mosaic_0001>
module attributes {stable_mosaic.version = 11 : i64} {
  func.func @_relu_kernel(%arg0: i32, %arg1: memref<1x2048xf32, #tpu.memory_space<vmem>>, %arg2: memref<1x2048xf32, #tpu.memory_space<vmem>>) attributes {dimension_semantics = [#tpu.dimension_semantics<parallel>], iteration_bounds = array<i64: 1>, scalar_prefetch = 0 : i64, scratch_operands = 0 : i64, tpu.core_type = #tpu.core_type<tc>, window_params = [{transform_indices = @transform_0, window_bounds = array<i64: 1, 2048>}, {transform_indices = @transform_1, window_bounds = array<i64: 1, 2048>}]} {
    %c0 = arith.constant 0 : index
    %c0_0 = arith.constant 0 : index
    %0 = vector.load %arg1[%c0, %c0_0] : memref<1x2048xf32, #tpu.memory_space<vmem>>, vector<1x2048xf32>
    %cst = arith.constant 0.000000e+00 : f32
    %1 = vector.broadcast %cst : f32 to vector<1x2048xf32>
    %2 = arith.maximumf %0, %1 : vector<1x2048xf32>
    %c0_1 = arith.constant 0 : index
    %c0_2 = arith.constant 0 : index
    %3 = vector.load %arg2[%c0_1, %c0_2] : memref<1x2048xf32, #tpu.memory_space<vmem>>, vector<1x2048xf32>
    tpu.vector_store %arg2[%c0_1, %c0_2], %2 {strides = array<i32>} : memref<1x2048xf32, #tpu.memory_space<vmem>>, vector<1x2048xf32>,
    return
  }
  func.func @transform_0(%arg0: i32) -> (i32, i32) {
    %c0_i32 = arith.constant 0 : i32
    %c0_i32_0 = arith.constant 0 : i32
    return %arg0, %c0_i32 : i32, i32
  }
  func.func @transform_1(%arg0: i32) -> (i32, i32) {
    %c0_i32 = arith.constant 0 : i32
    %c0_i32_0 = arith.constant 0 : i32
    return %arg0, %c0_i32 : i32, i32
  }
}

</mosaic_0001>

<bundles_post_ra>
// kernel: pallas_relu.1
= control target key start
LH: loop header
LB: loop body
LE: loop exit
PB: predicated region body
PF: predicated region fallthrough
CT: control target
= control target key end

     0   :  { %s40_s0 = inlined_call_operand.vmem [shape: f32[1,2048], index: 0, kind: input, shape index: {}]   ;;  %s41_s1 = inlined_call_operand.vmem [shape: f32[1,2048], index: 1, kind: output, shape index: {}]  }
   0x1   :  { %v8_v0 = vld [vmem:[%s40_s0] sm:$0xff]  ;;  %v9_v1 = vld [vmem:[%s40_s0 + $0x8] sm:$0xff] }
   0x2   :  { %v10_v2 = vmax.f32 %v8_v0, 0.0  ;;  %v11_v3 = vmax.f32 %v9_v1, 0.0 }
   0x4   :  { %12 = vst [vmem:[%s41_s1] sm:$0xff] %v10_v2 }
   0x5   :  { %13 = vst [vmem:[%s41_s1 + $0x8] sm:$0xff] %v11_v3 }

</bundles_post_ra>
